<compile_context>
chip_gen: v6e
topology: v6e:2x2x1
jax: 0.10.0
libtpu: 0.0.40
codegen_flags: <defaults>
</compile_context>

<pallas_src>
import jax
import jax.numpy as jnp
from jax.experimental import pallas as pl
from jax.experimental.pallas import tpu as pltpu

_NEG_BIG = -1e30  # finite "-inf" bias for padded vocab columns


def _projection_kernel(x_ref, w_ref, b_ref, o_ref, z_sc, m_sc, l_sc, lse_sc):
    # x_ref:  (tm, D)  bf16   token-tile activations (resident across p, v)
    # w_ref:  (D, tv)  bf16   vocab tile of the projection matrix
    # b_ref:  (1, tv)  f32    vocab tile of the bias (-1e30 in padded columns)
    # o_ref:  (tm, tv)        output log-prob tile (written in pass 1 only)
    # z_sc:   (v_tiles, tm, tv) f32 logits cache for the whole vocab row-slab
    # m_sc / l_sc / lse_sc: (tm, 1) f32 running max / running sum-exp / lse
    p = pl.program_id(1)   # 0 = reduction pass, 1 = write pass
    v = pl.program_id(2)   # vocab tile index

    @pl.when(jnp.logical_and(p == 0, v == 0))
    def _():
        m_sc[...] = jnp.full_like(m_sc, -jnp.inf)
        l_sc[...] = jnp.zeros_like(l_sc)

    @pl.when(p == 0)
    def _():
        # bf16 MXU matmul with f32 accumulation; bias + softmax stats in f32.
        z = jnp.dot(x_ref[...], w_ref[...], preferred_element_type=jnp.float32)
        z = z + b_ref[...]
        z_sc[v] = z                      # cache logits; pass 1 reuses them
        m_prev = m_sc[...]
        m_new = jnp.maximum(m_prev, jnp.max(z, axis=-1, keepdims=True))
        l_sc[...] = (l_sc[...] * jnp.exp(m_prev - m_new)
                     + jnp.sum(jnp.exp(z - m_new), axis=-1, keepdims=True))
        m_sc[...] = m_new

    @pl.when(jnp.logical_and(p == 1, v == 0))
    def _():
        # Hoisted: one log + add per token tile instead of per vocab tile.
        lse_sc[...] = m_sc[...] + jnp.log(l_sc[...])

    @pl.when(p == 1)
    def _():
        o_ref[...] = (z_sc[v] - lse_sc[...]).astype(o_ref.dtype)


def _round_up(a, m):
    return (a + m - 1) // m * m


def _choose_tiles(n, vocab, *, logits_budget_bytes=24 << 20):
    # Lane-dense vocab tile: up to 1024 lanes for large vocab (no tv=128
    # degradation); tiny vocab is only padded to the next multiple of 128.
    tv = min(1024, _round_up(vocab, 128))
    v_pad = _round_up(vocab, tv)
    # Token tile: 256 rows fills the v6e/v7x MXU height and halves W streaming
    # vs tm=128; shrink if the f32 logits cache would blow the (v7x-safe)
    # budget, and never pad tiny/decode batches beyond the 8-sublane minimum.
    tm = 256
    while tm > 8 and tm * v_pad * 4 > logits_budget_bytes:
        tm //= 2
    tm = min(tm, _round_up(n, 8))
    n_pad = _round_up(n, tm)
    return tm, tv, n_pad, v_pad


def projection_layer(x, w, b):
    """ProjectionLayer forward: log_softmax(x @ w + b, axis=-1).

    x: (batch, seq, d_model), w: (d_model, vocab), b: (vocab,)
    -> log-probabilities (batch, seq, vocab) in x.dtype.
    """
    batch, seq, d_model = x.shape
    d_model_w, vocab = w.shape
    assert d_model == d_model_w and b.shape == (vocab,)

    n = batch * seq
    tm, tv, n_pad, v_pad = _choose_tiles(n, vocab)
    n_tiles, v_tiles = n_pad // tm, v_pad // tv

    # bf16 matmul operands (documented precision choice); bias stays f32.
    x2 = x.reshape(n, d_model).astype(jnp.bfloat16)
    if n_pad != n:
        x2 = jnp.pad(x2, ((0, n_pad - n), (0, 0)))
    w2 = w.astype(jnp.bfloat16)
    b2 = b.astype(jnp.float32).reshape(1, vocab)
    if v_pad != vocab:
        w2 = jnp.pad(w2, ((0, 0), (0, v_pad - vocab)))
        b2 = jnp.pad(b2, ((0, 0), (0, v_pad - vocab)),
                     constant_values=_NEG_BIG)

    out_dtype = x.dtype
    out_bytes = jnp.dtype(out_dtype).itemsize

    # Scoped VMEM: double-buffered blocks + logits cache, with headroom.
    vmem_est = (2 * tm * d_model * 2            # x blocks (bf16)
                + 2 * d_model * tv * 2          # W blocks (bf16)
                + 2 * tv * 4                    # bias blocks
                + 2 * tm * tv * out_bytes       # output blocks
                + v_tiles * tm * tv * 4         # logits cache
                + 3 * tm * 4)                   # m / l / lse
    vmem_limit = int(min(64 << 20,
                         max(32 << 20, int(vmem_est * 1.5) + (2 << 20))))

    cost = pl.CostEstimate(
        flops=2 * n_pad * d_model * v_pad,
        transcendentals=n_pad * v_pad + n_pad,
        bytes_accessed=(n_pad * d_model * 2 + d_model * v_pad * 2
                        + v_pad * 4 + n_pad * v_pad * out_bytes),
    )

    grid = (n_tiles, 2, v_tiles)

    out = pl.pallas_call(
        _projection_kernel,
        out_shape=jax.ShapeDtypeStruct((n_pad, v_pad), out_dtype),
        grid_spec=pltpu.PrefetchScalarGridSpec(
            num_scalar_prefetch=0,
            grid=grid,
            in_specs=[
                # x: resident for the whole (p, v) sweep of one token tile.
                pl.BlockSpec((tm, d_model), lambda i, p, v: (i, 0)),
                # W / bias: stream over v in pass 0, park on tile 0 in pass 1
                # so the write pass never re-streams W from HBM.
                pl.BlockSpec((d_model, tv), lambda i, p, v: (0, v * (1 - p))),
                pl.BlockSpec((1, tv), lambda i, p, v: (0, v * (1 - p))),
            ],
            # Parked on (i, 0) during pass 0, tiled over v in pass 1 -> every
            # output block is written back to HBM exactly once.
            out_specs=pl.BlockSpec((tm, tv), lambda i, p, v: (i, p * v)),
            scratch_shapes=[
                pltpu.VMEM((v_tiles, tm, tv), jnp.float32),  # logits cache
                pltpu.VMEM((tm, 1), jnp.float32),            # running max
                pltpu.VMEM((tm, 1), jnp.float32),            # running sum-exp
                pltpu.VMEM((tm, 1), jnp.float32),            # logsumexp
            ],
        ),
        compiler_params=pltpu.CompilerParams(
            dimension_semantics=("parallel", "arbitrary", "arbitrary"),
            vmem_limit_bytes=vmem_limit,
        ),
        cost_estimate=cost,
    )(x2, w2, b2)

    # TODO(synk): add a K (d_model) reduction grid axis with an f32 VMEM
    # accumulator for d_model >= ~8192 (needed earlier on v7x's 64 MiB VMEM).
    # TODO(synk): on v7x (2 TensorCores) with decode-sized n (a single token
    # tile), split the token tile or make the vocab axis core-parallel with a
    # cross-core LSE combine so both cores are used.
    # TODO(synk): for vocab so large that even tm=8 rows of f32 logits exceed
    # the cache budget, fall back to a logits-in-HBM two-call variant.

    if n_pad != n or v_pad != vocab:
        out = out[:n, :vocab]
    return out.reshape(batch, seq, vocab)


if __name__ == "__main__":
    # Small shapes consistent with the module: model_dimensions=32, vocab=64.
    batch, seq, model_dimensions, vocab_size = 2, 8, 32, 64

    key = jax.random.PRNGKey(0)
    kx, kw, kb = jax.random.split(key, 3)

    x = jax.random.normal(kx, (batch, seq, model_dimensions), dtype=jnp.float32)
    # nn.Linear-style uniform init, stored pre-transposed as (d_model, vocab).
    bound = 1.0 / (model_dimensions ** 0.5)
    w = jax.random.uniform(kw, (model_dimensions, vocab_size),
                           dtype=jnp.float32, minval=-bound, maxval=bound)
    b = jax.random.uniform(kb, (vocab_size,), dtype=jnp.float32,
                           minval=-bound, maxval=bound)

    y = projection_layer(x, w, b)
    jax.block_until_ready(y)
    assert y.shape == (batch, seq, vocab_size)

    # Reference computed with the same bf16-rounded matmul operands
    # (f32 accumulate), matching the kernel's documented MXU precision choice.
    x_r = x.astype(jnp.bfloat16).astype(jnp.float32)
    w_r = w.astype(jnp.bfloat16).astype(jnp.float32)
    ref = jax.nn.log_softmax(jnp.einsum("bsd,dv->bsv", x_r, w_r) + b, axis=-1)
    assert jnp.allclose(y, ref, atol=1e-3, rtol=1e-3), float(
        jnp.max(jnp.abs(y - ref)))

    print("KERNEL_OK")
</pallas_src>

<mosaic_0001>
module attributes {stable_mosaic.version = 11 : i64} {
  func.func @_projection_kernel(%arg0: i32, %arg1: i32, %arg2: i32, %arg3: memref<16x32xbf16, #tpu.memory_space<vmem>>, %arg4: memref<32x128xbf16, #tpu.memory_space<vmem>>, %arg5: memref<1x128xf32, #tpu.memory_space<vmem>>, %arg6: memref<16x128xf32, #tpu.memory_space<vmem>>, %arg7: memref<1x16x128xf32, #tpu.memory_space<vmem>>, %arg8: memref<16x1xf32, #tpu.memory_space<vmem>>, %arg9: memref<16x1xf32, #tpu.memory_space<vmem>>, %arg10: memref<16x1xf32, #tpu.memory_space<vmem>>) attributes {dimension_semantics = [#tpu.dimension_semantics<parallel>, #tpu.dimension_semantics<arbitrary>, #tpu.dimension_semantics<arbitrary>], iteration_bounds = array<i64: 1, 2, 1>, scalar_prefetch = 0 : i64, scratch_operands = 4 : i64, tpu.core_type = #tpu.core_type<tc>, window_params = [{transform_indices = @transform_0, window_bounds = array<i64: 16, 32>}, {transform_indices = @transform_1, window_bounds = array<i64: 32, 128>}, {transform_indices = @transform_2, window_bounds = array<i64: 1, 128>}, {transform_indices = @transform_3, window_bounds = array<i64: 16, 128>}]} {
    %c0_i32 = arith.constant 0 : i32
    %0 = arith.cmpi eq, %arg1, %c0_i32 : i32
    %c0_i32_0 = arith.constant 0 : i32
    %1 = arith.cmpi eq, %arg2, %c0_i32_0 : i32
    %2 = arith.andi %0, %1 : i1
    %3 = arith.extui %2 : i1 to i32
    %c0_i32_1 = arith.constant 0 : i32
    %4 = arith.cmpi ne, %3, %c0_i32_1 : i32
    scf.if %4 {
      %cst = arith.constant 0xFF800000 : f32
      %16 = vector.broadcast %cst : f32 to vector<16x1xf32>
      %c0 = arith.constant 0 : index
      %c0_8 = arith.constant 0 : index
      %17 = vector.load %arg8[%c0, %c0_8] : memref<16x1xf32, #tpu.memory_space<vmem>>, vector<16x1xf32>
      tpu.vector_store %arg8[%c0, %c0_8], %16 {strides = array<i32>} : memref<16x1xf32, #tpu.memory_space<vmem>>, vector<16x1xf32>,
      %cst_9 = arith.constant 0.000000e+00 : f32
      %18 = vector.broadcast %cst_9 : f32 to vector<16x1xf32>
      %c0_10 = arith.constant 0 : index
      %c0_11 = arith.constant 0 : index
      %19 = vector.load %arg9[%c0_10, %c0_11] : memref<16x1xf32, #tpu.memory_space<vmem>>, vector<16x1xf32>
      tpu.vector_store %arg9[%c0_10, %c0_11], %18 {strides = array<i32>} : memref<16x1xf32, #tpu.memory_space<vmem>>, vector<16x1xf32>,
    } else {
    }
    %c0_i32_2 = arith.constant 0 : i32
    %5 = arith.cmpi eq, %arg1, %c0_i32_2 : i32
    %6 = arith.extui %5 : i1 to i32
    %c0_i32_3 = arith.constant 0 : i32
    %7 = arith.cmpi ne, %6, %c0_i32_3 : i32
    scf.if %7 {
      %c0 = arith.constant 0 : index
      %c0_8 = arith.constant 0 : index
      %16 = vector.load %arg3[%c0, %c0_8] : memref<16x32xbf16, #tpu.memory_space<vmem>>, vector<16x32xbf16>
      %c0_9 = arith.constant 0 : index
      %c0_10 = arith.constant 0 : index
      %17 = vector.load %arg4[%c0_9, %c0_10] : memref<32x128xbf16, #tpu.memory_space<vmem>>, vector<32x128xbf16>
      %cst = arith.constant dense<0.000000e+00> : vector<16x128xf32>
      %18 = tpu.matmul %16, %17, %cst {dimension_numbers = #tpu.dot_dimension_numbers<[1], [0], [0], [1], [0, 0, 1, 1], [], []>} : vector<16x32xbf16>, vector<32x128xbf16>, vector<16x128xf32> -> vector<16x128xf32>
      %c0_11 = arith.constant 0 : index
      %c0_12 = arith.constant 0 : index
      %19 = vector.load %arg5[%c0_11, %c0_12] : memref<1x128xf32, #tpu.memory_space<vmem>>, vector<1x128xf32>
      %20 = vector.broadcast %19 : vector<1x128xf32> to vector<16x128xf32>
      %21 = arith.addf %18, %20 : vector<16x128xf32>
      %22 = arith.index_cast %arg2 : i32 to index
      %c0_13 = arith.constant 0 : index
      %c0_14 = arith.constant 0 : index
      %23 = vector.load %arg7[%22, %c0_13, %c0_14] : memref<1x16x128xf32, #tpu.memory_space<vmem>>, vector<1x16x128xf32>
      %24 = vector.shape_cast %23 : vector<1x16x128xf32> to vector<16x128xf32>
      %25 = vector.shape_cast %21 : vector<16x128xf32> to vector<1x16x128xf32>
      tpu.vector_store %arg7[%22, %c0_13, %c0_14], %25 {strides = array<i32>} : memref<1x16x128xf32, #tpu.memory_space<vmem>>, vector<1x16x128xf32>,
      %c0_15 = arith.constant 0 : index
      %c0_16 = arith.constant 0 : index
      %26 = vector.load %arg8[%c0_15, %c0_16] : memref<16x1xf32, #tpu.memory_space<vmem>>, vector<16x1xf32>
      %cst_17 = arith.constant dense<0xFF800000> : vector<16xf32>
      %27 = vector.multi_reduction <maximumf>, %21, %cst_17 [1] : vector<16x128xf32> to vector<16xf32>
      %28 = vector.shape_cast %27 : vector<16xf32> to vector<16x1xf32>
      %29 = arith.maximumf %26, %28 : vector<16x1xf32>
      %c0_18 = arith.constant 0 : index
      %c0_19 = arith.constant 0 : index
      %30 = vector.load %arg9[%c0_18, %c0_19] : memref<16x1xf32, #tpu.memory_space<vmem>>, vector<16x1xf32>
      %31 = arith.subf %26, %29 : vector<16x1xf32>
      %32 = math.exp %31 : vector<16x1xf32>
      %33 = arith.mulf %30, %32 : vector<16x1xf32>
      %34 = vector.broadcast %29 : vector<16x1xf32> to vector<16x128xf32>
      %35 = arith.subf %21, %34 : vector<16x128xf32>
      %36 = math.exp %35 : vector<16x128xf32>
      %cst_20 = arith.constant dense<0.000000e+00> : vector<16xf32>
      %37 = vector.multi_reduction <add>, %36, %cst_20 [1] : vector<16x128xf32> to vector<16xf32>
      %38 = vector.shape_cast %37 : vector<16xf32> to vector<16x1xf32>
      %39 = arith.addf %33, %38 : vector<16x1xf32>
      %c0_21 = arith.constant 0 : index
      %c0_22 = arith.constant 0 : index
      %40 = vector.load %arg9[%c0_21, %c0_22] : memref<16x1xf32, #tpu.memory_space<vmem>>, vector<16x1xf32>
      tpu.vector_store %arg9[%c0_21, %c0_22], %39 {strides = array<i32>} : memref<16x1xf32, #tpu.memory_space<vmem>>, vector<16x1xf32>,
      %c0_23 = arith.constant 0 : index
      %c0_24 = arith.constant 0 : index
      %41 = vector.load %arg8[%c0_23, %c0_24] : memref<16x1xf32, #tpu.memory_space<vmem>>, vector<16x1xf32>
      tpu.vector_store %arg8[%c0_23, %c0_24], %29 {strides = array<i32>} : memref<16x1xf32, #tpu.memory_space<vmem>>, vector<16x1xf32>,
    } else {
    }
    %c1_i32 = arith.constant 1 : i32
    %8 = arith.cmpi eq, %arg1, %c1_i32 : i32
    %c0_i32_4 = arith.constant 0 : i32
    %9 = arith.cmpi eq, %arg2, %c0_i32_4 : i32
    %10 = arith.andi %8, %9 : i1
    %11 = arith.extui %10 : i1 to i32
    %c0_i32_5 = arith.constant 0 : i32
    %12 = arith.cmpi ne, %11, %c0_i32_5 : i32
    scf.if %12 {
      %c0 = arith.constant 0 : index
      %c0_8 = arith.constant 0 : index
      %16 = vector.load %arg8[%c0, %c0_8] : memref<16x1xf32, #tpu.memory_space<vmem>>, vector<16x1xf32>
      %c0_9 = arith.constant 0 : index
      %c0_10 = arith.constant 0 : index
      %17 = vector.load %arg9[%c0_9, %c0_10] : memref<16x1xf32, #tpu.memory_space<vmem>>, vector<16x1xf32>
      %18 = math.log %17 : vector<16x1xf32>
      %19 = arith.addf %16, %18 : vector<16x1xf32>
      %c0_11 = arith.constant 0 : index
      %c0_12 = arith.constant 0 : index
      %20 = vector.load %arg10[%c0_11, %c0_12] : memref<16x1xf32, #tpu.memory_space<vmem>>, vector<16x1xf32>
      tpu.vector_store %arg10[%c0_11, %c0_12], %19 {strides = array<i32>} : memref<16x1xf32, #tpu.memory_space<vmem>>, vector<16x1xf32>,
    } else {
    }
    %c1_i32_6 = arith.constant 1 : i32
    %13 = arith.cmpi eq, %arg1, %c1_i32_6 : i32
    %14 = arith.extui %13 : i1 to i32
    %c0_i32_7 = arith.constant 0 : i32
    %15 = arith.cmpi ne, %14, %c0_i32_7 : i32
    scf.if %15 {
      %16 = arith.index_cast %arg2 : i32 to index
      %c0 = arith.constant 0 : index
      %c0_8 = arith.constant 0 : index
      %17 = vector.load %arg7[%16, %c0, %c0_8] : memref<1x16x128xf32, #tpu.memory_space<vmem>>, vector<1x16x128xf32>
      %18 = vector.shape_cast %17 : vector<1x16x128xf32> to vector<16x128xf32>
      %c0_9 = arith.constant 0 : index
      %c0_10 = arith.constant 0 : index
      %19 = vector.load %arg10[%c0_9, %c0_10] : memref<16x1xf32, #tpu.memory_space<vmem>>, vector<16x1xf32>
      %20 = vector.broadcast %19 : vector<16x1xf32> to vector<16x128xf32>
      %21 = arith.subf %18, %20 : vector<16x128xf32>
      %c0_11 = arith.constant 0 : index
      %c0_12 = arith.constant 0 : index
      %22 = vector.load %arg6[%c0_11, %c0_12] : memref<16x128xf32, #tpu.memory_space<vmem>>, vector<16x128xf32>
      tpu.vector_store %arg6[%c0_11, %c0_12], %21 {strides = array<i32>} : memref<16x128xf32, #tpu.memory_space<vmem>>, vector<16x128xf32>,
    } else {
    }
    return
  }
  func.func @transform_0(%arg0: i32, %arg1: i32, %arg2: i32) -> (i32, i32) {
    %c0_i32 = arith.constant 0 : i32
    %c0_i32_0 = arith.constant 0 : i32
    return %arg0, %c0_i32 : i32, i32
  }
  func.func @transform_1(%arg0: i32, %arg1: i32, %arg2: i32) -> (i32, i32) {
    %c1_i32 = arith.constant 1 : i32
    %0 = arith.subi %c1_i32, %arg1 : i32
    %1 = arith.muli %arg2, %0 : i32
    %c0_i32 = arith.constant 0 : i32
    %c0_i32_0 = arith.constant 0 : i32
    return %c0_i32, %1 : i32, i32
  }
  func.func @transform_2(%arg0: i32, %arg1: i32, %arg2: i32) -> (i32, i32) {
    %c1_i32 = arith.constant 1 : i32
    %0 = arith.subi %c1_i32, %arg1 : i32
    %1 = arith.muli %arg2, %0 : i32
    %c0_i32 = arith.constant 0 : i32
    %c0_i32_0 = arith.constant 0 : i32
    return %c0_i32, %1 : i32, i32
  }
  func.func @transform_3(%arg0: i32, %arg1: i32, %arg2: i32) -> (i32, i32) {
    %0 = arith.muli %arg1, %arg2 : i32
    %c0_i32 = arith.constant 0 : i32
    return %arg0, %0 : i32, i32
  }
}

</mosaic_0001>

<bundles_post_ra>
// kernel: tpu_custom_call.1
= control target key start
LH: loop header
LB: loop body
LE: loop exit
PB: predicated region body
PF: predicated region fallthrough
CT: control target
= control target key end

     0   :  { %8 = vsyncpa [#allocation7], 0  ;;  %s954_s0 = inlined_call_operand.hbm [shape: bf16[16,32], index: 0, kind: input, shape index: {}]   ;;  %s955_s1 = inlined_call_operand.hbm [shape: bf16[32,128], index: 1, kind: input, shape index: {}]   ;;  %s956_s2 = inlined_call_operand.vmem [shape: f32[1,128], index: 2, kind: input, shape index: {}]   ;;  %s957_s3 = inlined_call_operand.hbm [shape: f32[16,128], index: 3, kind: output, shape index: {}]  }
   0x1   :  { %9 = vsyncpa [#allocation10], 0 }
   0x2   :  { %11 = vsyncpa [#allocation10 + $0x1], 0 }
   0x3   :  { %12 = vsyncpa [#allocation8], 0 }
   0x4   :  { %14 = vsyncpa [#allocation8 + $0x1], 0  ;;  %s850_s12 = smov 0   ;;  %s852_s13 = smov 0  }
   0x5   :  { %s854_s14 = smov 0  }
   0x6 LB: > { %s582_s15 = sadd.s32 4294967295, %s815_s14   ;;  %s583_s16 = sadd.s32 4294967294, %s815_s14   ;;  %s815_s14 = sphi %s854_s14, %s20_s14   ;;  %s811_s13 = sphi %s852_s13, %s965_s13   ;;  %s807_s12 = sphi %s850_s12, %s964_s12  }
   0x7   : > { %s35_s17 = sadd.s32 1, %s811_s13  ;;  %p584_p0 = scmp.ge.s32.totalorder %s815_s14, 1 }
   0x8   : > { %p37_p1 = scmp.ge.s32.totalorder %s35_s17, 2  ;;  %p160_p2 = scmp.lt.s32.totalorder %s815_s14, 3 }
   0x9   : > { %p872_p3 = scmp.eq.s32.totalorder %s582_s15, 0  ;;  %s817_s20 = smov [#allocation6]  }
   0xa   : > { %s967_s17 = smov (%p37_p1, %s35_s17), 0  ;;  %p878_p4 = pnand %p584_p0, %p160_p2 }
   0xb   : > { %s175_s21 = sshll.u32 %s817_s20, 4  ;;  %p586_p6 = scmp.ge.s32.totalorder %s815_s14, 2  ;;  %s176_s21 = int_to_ptr.vmem [resolvable:$true] %s175_s21 }
   0xc   : > { %s960_s19 = scalar_select %p878_p4, 1, 0 }
   0xd   : > { %p630_p5 = pneg %p878_p4  ;;  %p643_p8 = scmp.lt.s32.totalorder %s815_s14, 2 }
   0xe   : > { %p644_p9 = scmp.eq.s32.totalorder %s815_s14, 0  ;;  %s716_s23 = scalar_lea.vmem %s176_s21, 128 }
   0xf   : > { %p887_p7 = pnand %p872_p3, %p630_p5  ;;  %p717_p11 = scmp.ne.s32.totalorder %s176_s21, %s716_s23 }
  0x10   : > { %p724_p0 = scmp.lt.s32.totalorder %s176_s21, %s176_s21  ;;  %p725_p1 = scmp.lt.s32.totalorder %s716_s23, %s716_s23 }
  0x11   : > { %p707_p10 = pneg %p887_p7 }
  0x12   : > { %p726_p2 = por %p725_p1, %p724_p0 }
  0x13   : > { %p719_p12 = pnand %p717_p11, %p707_p10 }
  0x15   : > { %p720_p13 = pneg %p719_p12 }
  0x17   : > { %p727_p4 = pnand %p726_p2, %p720_p13 }
  0x19   : > { %730 = shalt.err (!%p727_p4)
}
  0x1a   : > { %s818_s24 = smov 64   ;;  %s819_s25 = smov 4  }
  0x1b   : > { %633 = dma.hbm_to_vmem [thread:$0]  (!%p887_p7), %s954_s0, 128, %s176_s21, [#allocation7], %s818_s24, %s818_s24, %s819_s25  }
  0x1c   : > { %s820_s28 = smov [#allocation9]   ;;  %p635_p5 = pnand %p644_p9, %p643_p8 }
  0x1d   : > { %s201_s29 = sshll.u32 %s820_s28, 4  ;;  %s202_s29 = int_to_ptr.vmem [resolvable:$true] %s201_s29 }
  0x1e   : > { %p733_p10 = pneg %p635_p5  ;;  %s742_s30 = scalar_lea.vmem %s202_s29, 256 }
  0x1f   : > { %p743_p11 = scmp.ne.s32.totalorder %s202_s29, %s742_s30  ;;  %s749_s4 = scalar_lea.vmem %s202_s29, 512 }
  0x20   : > { %p750_p13 = scmp.lt.s32.totalorder %s202_s29, %s202_s29  ;;  %p751_p0 = scmp.lt.s32.totalorder %s749_s4, %s742_s30 }
  0x21   : > { %p745_p4 = pnand %p743_p11, %p733_p10 }
  0x22   : > { %p752_p1 = por %p751_p0, %p750_p13 }
  0x23   : > { %p746_p12 = pneg %p745_p4 }
  0x25   : > { %p753_p2 = pnand %p752_p1, %p746_p12 }
  0x27   : > { %756 = shalt.err (!%p753_p2)
}
  0x28   : > { %637 = dma.hbm_to_vmem [thread:$0]  (!%p635_p5), %s955_s1, 256, %s202_s29, [#allocation10], %s818_s24, %s818_s24, %s819_s25  }
  0x29   : > { %p962_p7 = scmp.ne.s32.totalorder %s960_s19, 0 }
  0x2b   : > { %223 = sbr.rel (%p962_p7) target bundleno = 876 (0x36c), region = 32 }
  0x30   : > { %794 = dma.done.wait (%p872_p3), [#allocation7], 128  }
  0x31   : > { %796 = vsyncadd (%p872_p3), [#allocation7], 4294967168 }
  0x32   : > { %798 = dma.done.wait (%p872_p3), [#allocation10], 256  }
  0x33   : > { %800 = vsyncadd (%p872_p3), [#allocation10], 4294967040  ;;  %p274_p8 = scmp.eq.s32.totalorder %s807_s12, 0 }
  0x34   : > { %vm280_vm0 = vcmask (%p274_p8), 7168   ;;  %v821_v0 = vmov (%p274_p8), -inf   ;;  %v822_v1 = vmov (%p274_p8), 0.0  }
  0x35   : > { %279 = sbr.rel (!%p274_p8) target bundleno = 58 (0x3a), region = 44  ;;  %281 = vst.msk [vmem:[#allocation3] sm:$0xff] (%p274_p8), %vm280_vm0, %v821_v0  ;;  %282 = vst.msk [vmem:[#allocation3 + $0x8] sm:$0xff] (%p274_p8), %vm280_vm0, %v821_v0 }
  0x36   : > { %283 = vst.msk [vmem:[#allocation4] sm:$0xff] (%p274_p8), %vm280_vm0, %v822_v1  ;;  %284 = vst.msk [vmem:[#allocation4 + $0x8] sm:$0xff] (%p274_p8), %vm280_vm0, %v822_v1 }
  0x3a PF: > { %p593_p9 = scmp.ne.s32.totalorder %s807_s12, 0 }
  0x3c   : > { %287 = sbr.rel (%p593_p9) target bundleno = 696 (0x2b8), region = 48 }
  0x41   : > { %v689_v2 = vld [vmem:[#allocation9 + $0x8] sm:$0xff]   ;;  %v823_v3 = vmov 0.0   ;;  %v690_v4 = vld [vmem:[#allocation9] sm:$0xff]   ;;  %vm824_vm1 = vmmov 0   ;;  %v691_v5 = vld [vmem:[#allocation6] sm:$0xff]   ;;  %vm318_vm2 = vcmask 261120  }
  0x42   : > { %610 = vmatprep.subr.bf16.mxu0 %v823_v3  ;;  %614 = vmatprep.mubr.msk.bf16.mxu0 %vm824_vm1, %v823_v3  ;;  %v594_v6 = vld [vmem:[%s956_s2] ss:$0 sm:$0xff]  ;;  %v825_v13 = vmov 0   ;;  %v367_v14 = vld [vmem:[#allocation3] sm:$0xff]  ;;  %vm407_vm3 = vcmask 7168   ;;  %v368_v17 = vld [vmem:[#allocation3 + $0x8] sm:$0xff] }
  0x43   : > { %611 = vmatpush3.bf16.msra.mxu0 %v689_v2  ;;  %687 = vset.pattern.permute.xlu1 %v825_v13  ;;  %v375_v33 = vld [vmem:[#allocation4] sm:$0xff]  ;;  %v376_v37 = vld [vmem:[#allocation4 + $0x8] sm:$0xff] }
  0x44   : > { %612 = vmatprep.subr.bf16.mxu0 %v823_v3  ;;  %688 = vset.pattern.permute.xlu0 %v825_v13 }
  0x47   : > { %613 = vmatpush3.bf16.msra.mxu0 %v690_v4 }
  0x4a   : > { %615 = vmatmul.mubr.msk.bf16.vlgmr.msra.gmra.mxu0 %vm318_vm2, %v691_v5 }
 0x10a   : > { %v356_v7 = vpop.f32.mrf.mxu0 }
 0x10b   : > { %v357_v8 = vadd.f32 %v594_v6, %v356_v7 }
 0x10c   : > { %v616_v9 = vpop.f32.mrf.mxu0 }
 0x10d   : > { %365 = vst [vmem:[#allocation2] sm:$0xff] %v357_v8  ;;  %369 = vmax.xlane.f32.xlu0 %v357_v8 }
 0x10e   : > { %v359_v10 = vpop.f32.mrf.mxu0 }
 0x10f   : > { %v360_v11 = vadd.f32 %v594_v6, %v359_v10 }
 0x110   : > { %v617_v12 = vpop.f32.mrf.mxu0 }
 0x111   : > { %366 = vst [vmem:[#allocation2 + $0x8] sm:$0xff] %v360_v11  ;;  %371 = vmax.xlane.f32.xlu0 %v360_v11 }
 0x196   : > { %v370_v15 = vpop.xlane.xlu0 %369 }
 0x197   : > { %v373_v16 = vmax.f32 %v367_v14, %v370_v15 }
 0x199   : > { %v377_v18 = vsub.f32 %v367_v14, %v373_v16  ;;  %410 = vst.msk [vmem:[#allocation3] sm:$0xff] %vm407_vm3, %v373_v16  ;;  %387 = vperm.xlu1 %687, %v373_v16  }
 0x19a   : > { %v372_v19 = vpop.xlane.xlu0 %371 }
 0x19b   : > { %v374_v20 = vmax.f32 %v368_v17, %v372_v19  ;;  %v379_v30 = vmul.f32 1.442695, %v377_v18 }
 0x19d   : > { %v378_v21 = vsub.f32 %v368_v17, %v374_v20  ;;  %411 = vst.msk [vmem:[#allocation3 + $0x8] sm:$0xff] %vm407_vm3, %v374_v20  ;;  %392 = vperm.xlu1 %687, %v374_v20  }
 0x19f   : > { %v381_v31 = vmul.f32 1.442695, %v378_v21 }
 0x214   : > { %v388_v22 = vpop.permute.xlu1 %387 }
 0x215   : > { %v395_v23 = vsub.f32 %v357_v8, %v388_v22 }
 0x217   : > { %v397_v24 = vmul.f32 1.442695, %v395_v23 }
 0x218   : > { %v393_v25 = vpop.permute.xlu1 %392 }
 0x219   : > { %692 = vpow2.f32 %v397_v24  ;;  %v396_v26 = vsub.f32 %v360_v11, %v393_v25 }
 0x21b   : > { %v399_v27 = vmul.f32 1.442695, %v396_v26 }
 0x21d   : > { %694 = vpow2.f32 %v399_v27 }
 0x21e   : > { %696 = vpow2.f32 %v379_v30 }
 0x21f   : > { %698 = vpow2.f32 %v381_v31 }
 0x226   : > { %v693_v28 = vpop.eup %692 }
 0x227   : > { %401 = vadd.xlane.f32.xlu0 %v693_v28 }
 0x22a   : > { %v695_v29 = vpop.eup %694 }
 0x22b   : > { %403 = vadd.xlane.f32.xlu1 %v695_v29  ;;  %v697_v32 = vpop.eup %696 }
 0x22c   : > { %v383_v34 = vmul.f32 %v697_v32, %v375_v33  ;;  %v699_v35 = vpop.eup %698 }
 0x22d   : > { %v384_v39 = vmul.f32 %v699_v35, %v376_v37 }
 0x2b0   : > { %v402_v36 = vpop.xlane.xlu0 %401 }
 0x2b1   : > { %v405_v38 = vadd.f32 %v402_v36, %v383_v34 }
 0x2b3   : > { %408 = vst.msk [vmem:[#allocation4] sm:$0xff] %vm407_vm3, %v405_v38 }
 0x2b4   : > { %v404_v40 = vpop.xlane.xlu1 %403 }
 0x2b5   : > { %v406_v41 = vadd.f32 %v404_v40, %v384_v39 }
 0x2b7   : > { %409 = vst.msk [vmem:[#allocation4 + $0x8] sm:$0xff] %vm407_vm3, %v406_v41 }
 0x2b8 PF: > { %p412_p3 = scmp.eq.s32.totalorder %s807_s12, 1 }
 0x2b9   : > { %v417_v45 = vld [vmem:[#allocation3] sm:$0xff] (%p412_p3)  ;;  %v418_v48 = vld [vmem:[#allocation3 + $0x8] sm:$0xff] (%p412_p3)  ;;  %vm427_vm4 = vcmask (%p412_p3), 7168  }
 0x2ba   : > { %416 = sbr.rel (!%p412_p3) target bundleno = 722 (0x2d2), region = 52  ;;  %v419_v42 = vld [vmem:[#allocation4] sm:$0xff] (%p412_p3) }
 0x2bb   : > { %700 = vlog2.f32 (%p412_p3), %v419_v42 }
 0x2be   : > { %v420_v43 = vld [vmem:[#allocation4 + $0x8] sm:$0xff] (%p412_p3) }
 0x2bf   : > { %702 = vlog2.f32 %v420_v43 }
 0x2c8   : > { %v701_v44 = vpop.eup %700 }
 0x2c9   : > { %v422_v47 = vmul.f32 0.6931472, %v701_v44 }
 0x2cb   : > { %v425_v50 = vadd.f32 %v422_v47, %v417_v45 }
 0x2cc   : > { %v703_v46 = vpop.eup %702 }
 0x2cd   : > { %v424_v49 = vmul.f32 0.6931472, %v703_v46  ;;  %428 = vst.msk [vmem:[#allocation5] sm:$0xff] %vm427_vm4, %v425_v50 }
 0x2cf   : > { %v426_v51 = vadd.f32 %v424_v49, %v418_v48 }
 0x2d1   : > { %429 = vst.msk [vmem:[#allocation5 + $0x8] sm:$0xff] %vm427_vm4, %v426_v51 }
 0x2d2 PF: > { %p600_p5 = scmp.ne.s32.totalorder %s807_s12, 1 }
 0x2d4   : > { %432 = sbr.rel (%p600_p5) target bundleno = 862 (0x35e), region = 56 }
 0x2d9   : > { %v437_v52 = vld [vmem:[#allocation5] sm:$0xff]  ;;  %v826_v53 = vmov 0   ;;  %v438_v54 = vld [vmem:[#allocation5 + $0x8] sm:$0xff]  ;;  %v435_v55 = vld [vmem:[#allocation2] sm:$0xff] }
 0x2da   : > { %704 = vset.pattern.permute.xlu0 %v826_v53  ;;  %v436_v58 = vld [vmem:[#allocation2 + $0x8] sm:$0xff] }
 0x2db   : > { %441 = vperm.xlu0 %704, %v437_v52  }
 0x2df   : > { %446 = vperm.xlu0 %704, %v438_v54  }
 0x356   : > { %v442_v56 = vpop.permute.xlu0 %441 }
 0x357   : > { %v449_v57 = vsub.f32 %v435_v55, %v442_v56 }
 0x359   : > { %451 = vst [vmem:[#allocation11] sm:$0xff] %v449_v57 }
 0x35a   : > { %v447_v59 = vpop.permute.xlu0 %446 }
 0x35b   : > { %v450_v60 = vsub.f32 %v436_v58, %v447_v59 }
 0x35d   : > { %452 = vst [vmem:[#allocation11 + $0x8] sm:$0xff] %v450_v60 }
 0x35e PF: > { %p930_p10 = scmp.eq.s32.totalorder %s582_s15, 1  ;;  %s827_s10 = smov [#allocation11]  }
 0x35f   : > { %s469_s11 = sshll.u32 %s827_s10, 4  ;;  %s470_s11 = int_to_ptr.vmem [resolvable:$true] %s469_s11 }
 0x360   : > { %s757_s12 = scalar_lea.vmem %s470_s11, 256  ;;  %s763_s18 = scalar_lea.vmem %s470_s11, 512 }
 0x361   : > { %p758_p11 = scmp.ne.s32.totalorder %s470_s11, %s757_s12  ;;  %p764_p13 = scmp.lt.s32.totalorder %s470_s11, %s470_s11 }
 0x362   : > { %p765_p0 = scmp.lt.s32.totalorder %s763_s18, %s757_s12 }
 0x363   : > { %p759_p4 = pnand %p758_p11, %p930_p10 }
 0x364   : > { %p766_p1 = por %p765_p0, %p764_p13 }
 0x365   : > { %p760_p12 = pneg %p759_p4 }
 0x367   : > { %p767_p2 = pnand %p766_p1, %p760_p12 }
 0x369   : > { %770 = shalt.err (!%p767_p2)
}
 0x36a   : > { %s828_s19 = smov 128   ;;  %s829_s15 = smov 8  }
 0x36b   : > { %627 = dma.vmem_to_hbm [thread:$0]  (%p930_p10), %s470_s11, 256, %s957_s3, [#allocation8], %s828_s19, %s828_s19, %s829_s15  }
 0x36c PF: > { %p649_p7 = scmp.eq.s32.totalorder %s583_s16, 1 }
 0x36e   : > { %p639_p8 = pnand %p649_p7, %p586_p6 }
 0x370   : > { %p640_p9 = pneg %p639_p8 }
 0x372   : > { %802 = dma.done.wait (%p640_p9), [#allocation8], 256  }
 0x373   : > { %804 = vsyncadd (%p640_p9), [#allocation8], 4294967040  ;;  %s20_s14 = sadd.s32 1, %s815_s14   ;;  %s964_s12 = smov %s811_s13 }
 0x374   : > { %p17_p3 = scmp.ge.s32.totalorder %s20_s14, 4   ;;  %s965_s13 = smov %s967_s17 }
 0x376   :  { %19 = sbr.rel (!%p17_p3) target bundleno = 6 (0x6), region = 104 }
 0x37b   :  { %490 = vsyncpa [#allocation7], 1 }
 0x37c   :  { %492 = vsyncpa [#allocation7 + $0x1], 1 }
 0x37d   :  { %493 = vsyncpa [#allocation10], 1 }
 0x37e   :  { %495 = vsyncpa [#allocation10 + $0x1], 1 }
 0x37f   :  { %496 = vsyncpa [#allocation8], 1 }
 0x380   :  { %498 = vsyncpa [#allocation8 + $0x1], 1 }

</bundles_post_ra>
